<compile_context>
chip_gen: v7x
topology: tpu7x:2x2x1
jax: 0.10.0
libtpu: 0.0.40
codegen_flags: <defaults>
</compile_context>

<pallas_src>
import jax
import jax.numpy as jnp
from jax.experimental import pallas as pl
from jax.experimental.pallas import tpu as pltpu


def _round_up(x, m):
    return ((x + m - 1) // m) * m


def _vmem_capacity_bytes():
    """Generation-aware VMEM capacity (conservative 64 MiB fallback: v7x)."""
    try:
        info = pltpu.get_tpu_info()
        cap = getattr(info, "vmem_capacity_bytes", None)
        if cap:
            return int(cap)
    except Exception:
        pass
    return 64 << 20


def _autoencoder_kernel(x_ref, we_ref, be_ref, wd_ref, bd_ref, out_ref):
    # encoder: Linear(input_dim -> hidden_dim_padded), bf16 operands on the
    # MXU with f32 accumulation; bias add + ReLU in f32 on the VPU.
    x = x_ref[...]
    z = jnp.dot(x, we_ref[...], preferred_element_type=jnp.float32)
    z = jnp.maximum(z + be_ref[...], 0.0)
    # decoder: Linear(hidden_dim_padded -> output_dim); z cast to the MXU
    # operand dtype, f32 accumulation, f32 bias add, f32 output.
    y = jnp.dot(z.astype(wd_ref.dtype), wd_ref[...],
                preferred_element_type=jnp.float32) + bd_ref[...]
    out_ref[...] = y.astype(out_ref.dtype)


def autoencoder_forward(x, w_enc, b_enc, w_dec, b_dec, *,
                        compute_dtype=jnp.bfloat16,
                        out_dtype=jnp.float32,
                        block_rows=4096):
    """x: [B, input_dim]; returns [B, output_dim] (same semantics as the
    PyTorch Linear->ReLU->Linear forward, with bf16 MXU operands and f32
    accumulation / elementwise by default).

    For best performance pass `x` already in `compute_dtype`; the fallback
    cast here is an extra XLA pass over x when dtypes differ."""
    B, input_dim = x.shape
    hidden_dim, output_dim = w_dec.shape
    assert w_enc.shape == (input_dim, hidden_dim)

    comp_itemsize = jnp.dtype(compute_dtype).itemsize
    out_itemsize = jnp.dtype(out_dtype).itemsize

    # ---- operand dtypes: MXU operands in compute_dtype, biases in f32 ----
    if x.dtype != compute_dtype:
        x = x.astype(compute_dtype)
    w_enc = w_enc.astype(compute_dtype)
    w_dec = w_dec.astype(compute_dtype)
    b_enc = jnp.asarray(b_enc, jnp.float32).reshape(1, hidden_dim)
    b_dec = jnp.asarray(b_dec, jnp.float32).reshape(1, output_dim)

    # ---- lane-dense hidden: zero-pad hidden_dim to a multiple of 128 ----
    # (resident weights only; ReLU(0)=0 and zero w_dec rows keep results exact)
    h_pad = _round_up(hidden_dim, 128)
    if h_pad != hidden_dim:
        w_enc = jnp.pad(w_enc, ((0, 0), (0, h_pad - hidden_dim)))
        b_enc = jnp.pad(b_enc, ((0, 0), (0, h_pad - hidden_dim)))
        w_dec = jnp.pad(w_dec, ((0, h_pad - hidden_dim), (0, 0)))

    # ---- batch tiling: multiple of 16 (bf16 sublane packing), no x padding;
    #      split so the grid has >=2 steps when B is big enough (v7x megacore)
    tb = min(block_rows, _round_up(B, 16))
    if B >= 32 and pl.cdiv(B, tb) < 2:
        tb = max(16, _round_up(pl.cdiv(B, 2), 16))

    # ---- VMEM sizing (generation-aware), shrink tile if over budget ----
    def vmem_bytes(tile):
        resident = comp_itemsize * (input_dim * h_pad + h_pad * output_dim) \
                   + 4 * (h_pad + output_dim)
        streamed = 2 * tile * (input_dim * comp_itemsize
                               + output_dim * out_itemsize)   # double-buffered
        interm = 4 * tile * h_pad                              # f32 z tile
        return resident + streamed + interm

    vmem_cap = _vmem_capacity_bytes()
    budget = int(0.45 * vmem_cap)
    while vmem_bytes(tb) > budget and tb > 256:
        tb = max(16, _round_up(tb // 2, 16))
    # TODO(synk): K-tiling fallback (grid over input_dim + f32 accumulator with
    # pl.when init/finalize) for production sizes whose resident weights alone
    # exceed the VMEM budget (relevant on v7x's 64 MiB).
    vmem_limit = int(min(max(2 * vmem_bytes(tb), 8 << 20),
                         int(0.75 * vmem_cap)))

    grid = (pl.cdiv(B, tb),)

    # Advisory cost estimate so XLA schedules around the custom call sensibly.
    flops = 2 * B * (input_dim * h_pad + h_pad * output_dim)
    bytes_accessed = (B * input_dim * comp_itemsize
                      + B * output_dim * out_itemsize
                      + comp_itemsize * (input_dim * h_pad + h_pad * output_dim)
                      + 4 * (h_pad + output_dim))

    out = pl.pallas_call(
        _autoencoder_kernel,
        out_shape=jax.ShapeDtypeStruct((B, output_dim), out_dtype),
        grid=grid,
        in_specs=[
            pl.BlockSpec((tb, input_dim), lambda i: (i, 0)),   # streamed x
            pl.BlockSpec(w_enc.shape, lambda i: (0, 0)),       # resident
            pl.BlockSpec(b_enc.shape, lambda i: (0, 0)),       # resident
            pl.BlockSpec(w_dec.shape, lambda i: (0, 0)),       # resident
            pl.BlockSpec(b_dec.shape, lambda i: (0, 0)),       # resident
        ],
        # True output width (no 128-padding): halves writeback bytes and avoids
        # a post-slice copy; the ragged last row-tile uses Pallas masked stores.
        out_specs=pl.BlockSpec((tb, output_dim), lambda i: (i, 0)),
        compiler_params=pltpu.CompilerParams(
            dimension_semantics=("parallel",),
            vmem_limit_bytes=vmem_limit,
        ),
        cost_estimate=pl.CostEstimate(
            flops=flops, transcendentals=0, bytes_accessed=bytes_accessed),
    )(x, w_enc, b_enc, w_dec, b_dec)

    return out


def init_params(key, input_dim, hidden_dim, output_dim, dtype=jnp.float32):
    k1, k2, k3, k4 = jax.random.split(key, 4)
    # torch.nn.Linear default init: U(-1/sqrt(fan_in), 1/sqrt(fan_in))
    lim_e = 1.0 / (input_dim ** 0.5)
    lim_d = 1.0 / (hidden_dim ** 0.5)
    w_enc = jax.random.uniform(k1, (input_dim, hidden_dim), dtype, -lim_e, lim_e)
    b_enc = jax.random.uniform(k2, (1, hidden_dim), dtype, -lim_e, lim_e)
    w_dec = jax.random.uniform(k3, (hidden_dim, output_dim), dtype, -lim_d, lim_d)
    b_dec = jax.random.uniform(k4, (1, output_dim), dtype, -lim_d, lim_d)
    return w_enc, b_enc, w_dec, b_dec


if __name__ == "__main__":
    key = jax.random.PRNGKey(0)
    # B not a multiple of the tile exercises the ragged-last-tile (masked
    # store) path; the >=2-grid-step rule splits it into two tiles of 128.
    B, input_dim, hidden_dim, output_dim = 250, 64, 32, 64

    kx, kp = jax.random.split(key)
    x_f32 = jax.random.normal(kx, (B, input_dim), jnp.float32)
    w_enc, b_enc, w_dec, b_dec = init_params(kp, input_dim, hidden_dim, output_dim)

    compute_dtype = jnp.bfloat16
    # Production activations are already bf16; cast once here so the kernel
    # streams half the bytes (no wrapper-side cast happens inside the call).
    x = x_f32.astype(compute_dtype)

    out = autoencoder_forward(x, w_enc, b_enc, w_dec, b_dec,
                              compute_dtype=compute_dtype,
                              out_dtype=jnp.float32,
                              block_rows=4096)
    out = jax.block_until_ready(out)

    # Mixed-precision reference with identical operand casts (bf16 operands,
    # f32 accumulation / bias / ReLU), so the comparison stays tight.
    we = w_enc.astype(compute_dtype)
    wd = w_dec.astype(compute_dtype)
    z_ref = jnp.maximum(
        jnp.dot(x, we, preferred_element_type=jnp.float32) + b_enc, 0.0)
    ref = jnp.dot(z_ref.astype(compute_dtype), wd,
                  preferred_element_type=jnp.float32) + b_dec

    assert out.shape == (B, output_dim)
    assert out.dtype == jnp.float32
    assert jnp.allclose(out, ref, atol=5e-3, rtol=5e-3)
    print("KERNEL_OK")
</pallas_src>

<mosaic_0001>
module attributes {stable_mosaic.version = 11 : i64} {
  func.func @_autoencoder_kernel(%arg0: i32, %arg1: memref<128x64xbf16, #tpu.memory_space<vmem>>, %arg2: memref<64x128xbf16, #tpu.memory_space<vmem>>, %arg3: memref<1x128xf32, #tpu.memory_space<vmem>>, %arg4: memref<128x64xbf16, #tpu.memory_space<vmem>>, %arg5: memref<1x64xf32, #tpu.memory_space<vmem>>, %arg6: memref<128x64xf32, #tpu.memory_space<vmem>>) attributes {dimension_semantics = [#tpu.dimension_semantics<parallel>], iteration_bounds = array<i64: 2>, scalar_prefetch = 0 : i64, scratch_operands = 0 : i64, tpu.core_type = #tpu.core_type<tc>, window_params = [{transform_indices = @transform_0, window_bounds = array<i64: 128, 64>}, {pipeline_mode = #tpu.pipeline_mode<synchronous>, transform_indices = @transform_1, window_bounds = array<i64: 64, 128>}, {pipeline_mode = #tpu.pipeline_mode<synchronous>, transform_indices = @transform_2, window_bounds = array<i64: 1, 128>}, {pipeline_mode = #tpu.pipeline_mode<synchronous>, transform_indices = @transform_3, window_bounds = array<i64: 128, 64>}, {pipeline_mode = #tpu.pipeline_mode<synchronous>, transform_indices = @transform_4, window_bounds = array<i64: 1, 64>}, {transform_indices = @transform_5, window_bounds = array<i64: 128, 64>}]} {
    %c0 = arith.constant 0 : index
    %c0_0 = arith.constant 0 : index
    %0 = vector.load %arg1[%c0, %c0_0] : memref<128x64xbf16, #tpu.memory_space<vmem>>, vector<128x64xbf16>
    %c0_1 = arith.constant 0 : index
    %c0_2 = arith.constant 0 : index
    %1 = vector.load %arg2[%c0_1, %c0_2] : memref<64x128xbf16, #tpu.memory_space<vmem>>, vector<64x128xbf16>
    %cst = arith.constant dense<0.000000e+00> : vector<128x128xf32>
    %2 = tpu.matmul %0, %1, %cst {dimension_numbers = #tpu.dot_dimension_numbers<[1], [0], [0], [1], [0, 0, 1, 1], [], []>} : vector<128x64xbf16>, vector<64x128xbf16>, vector<128x128xf32> -> vector<128x128xf32>
    %c0_3 = arith.constant 0 : index
    %c0_4 = arith.constant 0 : index
    %3 = vector.load %arg3[%c0_3, %c0_4] : memref<1x128xf32, #tpu.memory_space<vmem>>, vector<1x128xf32>
    %4 = vector.broadcast %3 : vector<1x128xf32> to vector<128x128xf32>
    %5 = arith.addf %2, %4 : vector<128x128xf32>
    %cst_5 = arith.constant 0.000000e+00 : f32
    %6 = vector.broadcast %cst_5 : f32 to vector<128x128xf32>
    %7 = arith.maximumf %5, %6 : vector<128x128xf32>
    %8 = arith.truncf %7 : vector<128x128xf32> to vector<128x128xbf16>
    %c0_6 = arith.constant 0 : index
    %c0_7 = arith.constant 0 : index
    %9 = vector.load %arg4[%c0_6, %c0_7] : memref<128x64xbf16, #tpu.memory_space<vmem>>, vector<128x64xbf16>
    %cst_8 = arith.constant dense<0.000000e+00> : vector<128x64xf32>
    %10 = tpu.matmul %8, %9, %cst_8 {dimension_numbers = #tpu.dot_dimension_numbers<[1], [0], [0], [1], [0, 0, 1, 1], [], []>} : vector<128x128xbf16>, vector<128x64xbf16>, vector<128x64xf32> -> vector<128x64xf32>
    %c0_9 = arith.constant 0 : index
    %c0_10 = arith.constant 0 : index
    %11 = vector.load %arg5[%c0_9, %c0_10] : memref<1x64xf32, #tpu.memory_space<vmem>>, vector<1x64xf32>
    %12 = vector.broadcast %11 : vector<1x64xf32> to vector<128x64xf32>
    %13 = arith.addf %10, %12 : vector<128x64xf32>
    %c0_11 = arith.constant 0 : index
    %c0_12 = arith.constant 0 : index
    %14 = vector.load %arg6[%c0_11, %c0_12] : memref<128x64xf32, #tpu.memory_space<vmem>>, vector<128x64xf32>
    tpu.vector_store %arg6[%c0_11, %c0_12], %13 {strides = array<i32>} : memref<128x64xf32, #tpu.memory_space<vmem>>, vector<128x64xf32>,
    return
  }
  func.func @transform_0(%arg0: i32) -> (i32, i32) {
    %c0_i32 = arith.constant 0 : i32
    %c0_i32_0 = arith.constant 0 : i32
    return %arg0, %c0_i32 : i32, i32
  }
  func.func @transform_1(%arg0: i32) -> (i32, i32) {
    %c0_i32 = arith.constant 0 : i32
    %c0_i32_0 = arith.constant 0 : i32
    %c0_i32_1 = arith.constant 0 : i32
    return %c0_i32, %c0_i32_0 : i32, i32
  }
  func.func @transform_2(%arg0: i32) -> (i32, i32) {
    %c0_i32 = arith.constant 0 : i32
    %c0_i32_0 = arith.constant 0 : i32
    %c0_i32_1 = arith.constant 0 : i32
    return %c0_i32, %c0_i32_0 : i32, i32
  }
  func.func @transform_3(%arg0: i32) -> (i32, i32) {
    %c0_i32 = arith.constant 0 : i32
    %c0_i32_0 = arith.constant 0 : i32
    %c0_i32_1 = arith.constant 0 : i32
    return %c0_i32, %c0_i32_0 : i32, i32
  }
  func.func @transform_4(%arg0: i32) -> (i32, i32) {
    %c0_i32 = arith.constant 0 : i32
    %c0_i32_0 = arith.constant 0 : i32
    %c0_i32_1 = arith.constant 0 : i32
    return %c0_i32, %c0_i32_0 : i32, i32
  }
  func.func @transform_5(%arg0: i32) -> (i32, i32) {
    %c0_i32 = arith.constant 0 : i32
    %c0_i32_0 = arith.constant 0 : i32
    return %arg0, %c0_i32 : i32, i32
  }
}

</mosaic_0001>

<bundles_post_ra>
// kernel: tpu_custom_call.1
= control target key start
LH: loop header
LB: loop body
LE: loop exit
PB: predicated region body
PF: predicated region fallthrough
CT: control target
= control target key end

     0   :  { %s917_s18 = smov 0   ;;  %s1032_s0 = inlined_call_operand.vmem [shape: bf16[250,64], index: 0, kind: input, shape index: {}]   ;;  %s1033_s1 = inlined_call_operand.vmem [shape: bf16[64,128], index: 1, kind: input, shape index: {}]   ;;  %s1034_s2 = inlined_call_operand.vmem [shape: f32[1,128], index: 2, kind: input, shape index: {}]   ;;  %s1035_s3 = inlined_call_operand.vmem [shape: bf16[128,64], index: 3, kind: input, shape index: {}]   ;;  %s1036_s4 = inlined_call_operand.vmem [shape: f32[1,64], index: 4, kind: input, shape index: {}]   ;;  %s1037_s5 = inlined_call_operand.vmem [shape: f32[250,64], index: 5, kind: output, shape index: {}]  }
   0x1 LB: > { %s710_s19 = sadd.s32 4294967295, %s885_s18   ;;  %p714_p0 = scmp.ge.s32.totalorder %s885_s18, 1  ;;  %s885_s18 = sphi %s917_s18, %s15_s18  }
   0x2   : > { %p188_p1 = scmp.lt.s32.totalorder %s885_s18, 3 }
   0x4   : > { %p189_p2 = pnand %p714_p0, %p188_p1 }
   0x5   : > { %v859_v0 = vld [vmem:[%s1033_s1] sm:$0xff] (!%p189_p2)   ;;  %s715_s22 = sshll.u32 (!%p189_p2), %s710_s19, 4  ;;  %v860_v1 = vld [vmem:[%s1033_s1 + $0x8] sm:$0xff] (!%p189_p2)   ;;  %v861_v2 = vld [vmem:[%s1033_s1 + $0x10] sm:$0xff] (!%p189_p2)   ;;  %vm324_vm0 = vcmask (!%p189_p2), 523264  }
   0x6   : > { %192 = sbr.rel (%p189_p2) target bundleno = 486 (0x1e6), region = 40  ;;  %p217_p3 = scmp.lt.s32.totalorder (!%p189_p2), %s715_s22, 31  ;;  %779 = vmatprep.subr.bf16.mxu0 (!%p189_p2), %v859_v0  ;;  %v871_v3 = vld [vmem:[%s1035_s3] sm:$0xff] (!%p189_p2)   ;;  %v872_v4 = vld [vmem:[%s1035_s3 + $0x8] sm:$0xff] (!%p189_p2)   ;;  %v862_v6 = vld [vmem:[%s1033_s1 + $0x18] sm:$0xff] (!%p189_p2)  }
   0x7   : > { %780 = vmatpush3.bf16.msra.mxu0 (!%p189_p2), %v859_v0  ;;  %835 = vmatprep.subr.bf16.mxu1 (!%p189_p2), %v871_v3  ;;  %v873_v7 = vld [vmem:[%s1035_s3 + $0x10] sm:$0xff] (!%p189_p2)   ;;  %v874_v10 = vld [vmem:[%s1035_s3 + $0x18] sm:$0xff] (!%p189_p2)   ;;  %v875_v11 = vld [vmem:[%s1035_s3 + $0x20] sm:$0xff] (!%p189_p2)  }
   0x8   : > { %781 = vmatprep.subr.bf16.mxu0 (!%p189_p2), %v860_v1  ;;  %843 = vmatpush3.bf16.msra.mxu1 (!%p189_p2), %v871_v3  ;;  %v876_v14 = vld [vmem:[%s1035_s3 + $0x28] sm:$0xff] (!%p189_p2)   ;;  %v877_v18 = vld [vmem:[%s1035_s3 + $0x30] sm:$0xff] (!%p189_p2)   ;;  %v878_v19 = vld [vmem:[%s1035_s3 + $0x38] sm:$0xff] (!%p189_p2)  }
   0x9   : > { %836 = vmatprep.subr.bf16.mxu1 (!%p189_p2), %v872_v4  ;;  %v719_v20 = vld [vmem:[%s1034_s2] ss:$0 sm:$0xff] (!%p189_p2) }
   0xb   : > { %782 = vmatpush3.bf16.msra.mxu0 (!%p189_p2), %v860_v1 }
   0xc   : > { %783 = vmatprep.subr.bf16.mxu0 (!%p189_p2), %v861_v2  ;;  %844 = vmatpush3.bf16.msra.mxu1 (!%p189_p2), %v872_v4 }
   0xd   : > { %s1039_s22 = smov (!%p217_p3, %s715_s22), 31  ;;  %837 = vmatprep.subr.bf16.mxu1 %v873_v7 }
   0xe   : > { %s716_s29 = sshll.u32 %s1039_s22, 2  ;;  %s718_s28 = sshll.u32 %s1039_s22, 3 }
   0xf   : > { %s943_s7 = scalar_lea.vmem %s1032_s0, %s716_s29  ;;  %784 = vmatpush3.bf16.msra.mxu0 %v861_v2  ;;  %s995_s8 = scalar_lea.vmem %s1037_s5, %s718_s28 }
  0x10   : > { %v863_v5 = vld [vmem:[%s943_s7] sm:$0xff]   ;;  %785 = vmatprep.subr.bf16.mxu0 %v862_v6  ;;  %v864_v8 = vld [vmem:[%s943_s7 + $0x8] sm:$0xff]   ;;  %v865_v9 = vld [vmem:[%s943_s7 + $0x10] sm:$0xff]   ;;  %845 = vmatpush3.bf16.msra.mxu1 %v873_v7 }
  0x11   : > { %787 = vmatprep.mubr.msk.bf16.mxu0 %vm324_vm0, %v863_v5  ;;  %838 = vmatprep.subr.bf16.mxu1 %v874_v10  ;;  %v866_v12 = vld [vmem:[%s943_s7 + $0x18] sm:$0xff]   ;;  %v867_v13 = vld [vmem:[%s943_s7 + $0x20] sm:$0xff]   ;;  %v868_v15 = vld [vmem:[%s943_s7 + $0x28] sm:$0xff]  }
  0x12   : > { %v869_v16 = vld [vmem:[%s943_s7 + $0x30] sm:$0xff]   ;;  %v870_v17 = vld [vmem:[%s943_s7 + $0x38] sm:$0xff]  }
  0x13   : > { %786 = vmatpush3.bf16.msra.mxu0 %v862_v6 }
  0x14   : > { %803 = vmatprep.subr.bf16.mxu0 %v871_v3  ;;  %846 = vmatpush3.bf16.msra.mxu1 %v874_v10 }
  0x15   : > { %839 = vmatprep.subr.bf16.mxu1 %v875_v11 }
  0x16   : > { %788 = vmatmul.mubr.msk.bf16.vlgmr.msra.gmra.mrb[0].mxu0 %vm324_vm0, %v864_v8 }
  0x17   : > { %791 = vmatprep.mubr.msk.bf16.mxu0 %vm324_vm0, %v865_v9  ;;  %804 = vmatpush3.bf16.msra.mxu0 %v871_v3 }
  0x18   : > { %805 = vmatprep.subr.bf16.mxu0 %v872_v4  ;;  %847 = vmatpush3.bf16.msra.mxu1 %v875_v11 }
  0x19   : > { %840 = vmatprep.subr.bf16.mxu1 %v876_v14 }
  0x1b   : > { %806 = vmatpush3.bf16.msra.mxu0 %v872_v4 }
  0x1c   : > { %807 = vmatprep.subr.bf16.mxu0 %v873_v7  ;;  %848 = vmatpush3.bf16.msra.mxu1 %v876_v14 }
  0x1d   : > { %841 = vmatprep.subr.bf16.mxu1 %v877_v18 }
  0x1e   : > { %792 = vmatmul.mubr.msk.bf16.gmra.mrb[4].mxu0 %vm324_vm0, %v866_v12 }
  0x1f   : > { %795 = vmatprep.mubr.msk.bf16.mxu0 %vm324_vm0, %v867_v13  ;;  %808 = vmatpush3.bf16.msra.mxu0 %v873_v7  ;;  %v740_v13 = vld [vmem:[%s1036_s4] ss:$0 sm:$0xff] }
  0x20   : > { %809 = vmatprep.subr.bf16.mxu0 %v874_v10  ;;  %849 = vmatpush3.bf16.msra.mxu1 %v877_v18 }
  0x21   : > { %842 = vmatprep.subr.bf16.mxu1 %v878_v19 }
  0x23   : > { %810 = vmatpush3.bf16.msra.mxu0 %v874_v10 }
  0x24   : > { %811 = vmatprep.subr.bf16.mxu0 %v875_v11  ;;  %850 = vmatpush3.bf16.msra.mxu1 %v878_v19 }
  0x26   : > { %796 = vmatmul.mubr.msk.bf16.gmra.mrb[8].mxu0 %vm324_vm0, %v868_v15 }
  0x27   : > { %799 = vmatprep.mubr.msk.bf16.mxu0 %vm324_vm0, %v869_v16  ;;  %812 = vmatpush3.bf16.msra.mxu0 %v875_v11 }
  0x28   : > { %813 = vmatprep.subr.bf16.mxu0 %v876_v14 }
  0x2b   : > { %814 = vmatpush3.bf16.msra.mxu0 %v876_v14 }
  0x2c   : > { %815 = vmatprep.subr.bf16.mxu0 %v877_v18 }
  0x2e   : > { %800 = vmatmul.mubr.msk.bf16.gmra.mrb[12].mxu0 %vm324_vm0, %v870_v17 }
  0x2f   : > { %816 = vmatpush3.bf16.msra.mxu0 %v877_v18 }
  0x30   : > { %817 = vmatprep.subr.bf16.mxu0 %v878_v19 }
  0x33   : > { %818 = vmatpush3.bf16.msra.mxu0 %v878_v19 }
  0xe9   : > { %v789_v21 = vpop.f32.mrb[0].mxu0 }
  0xea   : > { %v392_v22 = vadd.f32 %v789_v21, %v719_v20  ;;  %v383_v23 = vpop.f32.mrb[1].mxu0 }
  0xeb   : > { %v384_v24 = vadd.f32 %v719_v20, %v383_v23  ;;  %v790_v25 = vpop.f32.mrb[2].mxu0 }
  0xec   : > { %v395_v26 = vadd.f32 %v790_v25, %v719_v20  ;;  %v386_v27 = vpop.f32.mrb[3].mxu0  ;;  %v448_v29 = vmax.f32 %v392_v22, 0.0 }
  0xed   : > { %v387_v28 = vadd.f32 %v719_v20, %v386_v27  ;;  %v446_v31 = vmax.f32 %v384_v24, 0.0 }
  0xee   : > { %v449_v30 = vmax.f32 %v395_v26, 0.0 }
  0xef   : > { %v447_v32 = vmax.f32 %v387_v28, 0.0 }
  0xf0   : > { %v463_v33 = vpack.c.bf16 %v449_v30, %v448_v29 }
  0xf1   : > { %v462_v34 = vpack.c.bf16 %v447_v32, %v446_v31  ;;  %v793_v35 = vpop.f32.mrb[4].mxu0 }
  0xf2   : > { %v408_v36 = vadd.f32 %v793_v35, %v719_v20  ;;  %v399_v37 = vpop.f32.mrb[5].mxu0 }
  0xf3   : > { %v400_v38 = vadd.f32 %v719_v20, %v399_v37  ;;  %v794_v39 = vpop.f32.mrb[6].mxu0  ;;  %819 = vmatprep.mubr.bf16.mxu0 %v462_v34 }
  0xf4   : > { %v411_v40 = vadd.f32 %v794_v39, %v719_v20  ;;  %v402_v41 = vpop.f32.mrb[7].mxu0  ;;  %820 = vmatmul.mubr.bf16.vlgmr.msra.gmra.mrb[16].mxu0 %v463_v33  ;;  %v452_v43 = vmax.f32 %v408_v36, 0.0 }
  0xf5   : > { %v403_v42 = vadd.f32 %v719_v20, %v402_v41  ;;  %v450_v45 = vmax.f32 %v400_v38, 0.0 }
  0xf6   : > { %v453_v44 = vmax.f32 %v411_v40, 0.0 }
  0xf7   : > { %v451_v46 = vmax.f32 %v403_v42, 0.0 }
  0xf8   : > { %v465_v47 = vpack.c.bf16 %v453_v44, %v452_v43 }
  0xf9   : > { %v797_v48 = vpop.f32.mrb[8].mxu0  ;;  %v464_v49 = vpack.c.bf16 %v451_v46, %v450_v45 }
  0xfa   : > { %v424_v50 = vadd.f32 %v797_v48, %v719_v20  ;;  %v415_v51 = vpop.f32.mrb[9].mxu0 }
  0xfb   : > { %v416_v52 = vadd.f32 %v719_v20, %v415_v51  ;;  %v798_v53 = vpop.f32.mrb[10].mxu0  ;;  %823 = vmatprep.mubr.bf16.mxu1 %v464_v49 }
  0xfc   : > { %v427_v54 = vadd.f32 %v798_v53, %v719_v20  ;;  %v418_v55 = vpop.f32.mrb[11].mxu0  ;;  %824 = vmatmul.mubr.bf16.vlgmr.msra.gmra.mrb[0].mxu1 %v465_v47  ;;  %v456_v57 = vmax.f32 %v424_v50, 0.0 }
  0xfd   : > { %v419_v56 = vadd.f32 %v719_v20, %v418_v55  ;;  %v454_v59 = vmax.f32 %v416_v52, 0.0 }
  0xfe   : > { %v457_v58 = vmax.f32 %v427_v54, 0.0 }
  0xff   : > { %v455_v60 = vmax.f32 %v419_v56, 0.0 }
 0x100   : > { %v467_v61 = vpack.c.bf16 %v457_v58, %v456_v57 }
 0x101   : > { %v466_v62 = vpack.c.bf16 %v455_v60, %v454_v59  ;;  %v801_v63 = vpop.f32.mrb[12].mxu0 }
 0x102   : > { %v440_v0 = vadd.f32 %v801_v63, %v719_v20  ;;  %v431_v1 = vpop.f32.mrb[13].mxu0 }
 0x103   : > { %v432_v2 = vadd.f32 %v719_v20, %v431_v1  ;;  %v802_v3 = vpop.f32.mrb[14].mxu0  ;;  %827 = vmatprep.mubr.bf16.mxu1 %v466_v62 }
 0x104   : > { %v443_v4 = vadd.f32 %v802_v3, %v719_v20  ;;  %v434_v5 = vpop.f32.mrb[15].mxu0  ;;  %828 = vmatmul.mubr.bf16.gmra.mrb[4].mxu1 %v467_v61  ;;  %v460_v7 = vmax.f32 %v440_v0, 0.0 }
 0x105   : > { %v435_v6 = vadd.f32 %v719_v20, %v434_v5  ;;  %v458_v9 = vmax.f32 %v432_v2, 0.0 }
 0x106   : > { %v461_v8 = vmax.f32 %v443_v4, 0.0 }
 0x107   : > { %v459_v10 = vmax.f32 %v435_v6, 0.0 }
 0x108   : > { %v469_v11 = vpack.c.bf16 %v461_v8, %v460_v7 }
 0x109   : > { %v468_v12 = vpack.c.bf16 %v459_v10, %v458_v9 }
 0x10b   : > { %831 = vmatprep.mubr.bf16.mxu1 %v468_v12 }
 0x10c   : > { %832 = vmatmul.mubr.bf16.gmra.mrb[8].mxu1 %v469_v11 }
 0x1c7   : > { %v821_v14 = vpop.f32.mrb[16].mxu0 }
 0x1c8   : > { %v584_v15 = vadd.f32 %v821_v14, %v740_v13  ;;  %v575_v16 = vpop.f32.mrb[17].mxu0 }
 0x1c9   : > { %v576_v17 = vadd.f32 %v740_v13, %v575_v16  ;;  %v822_v18 = vpop.f32.mrb[18].mxu0 }
 0x1ca   : > { %640 = vst.msk [vmem:[%s995_s8 + $0x10] sm:$0xff] %vm324_vm0, %v584_v15  ;;  %v587_v19 = vadd.f32 %v822_v18, %v740_v13  ;;  %v578_v20 = vpop.f32.mrb[19].mxu0 }
 0x1cb   : > { %638 = vst.msk [vmem:[%s995_s8] sm:$0xff] %vm324_vm0, %v576_v17  ;;  %v579_v21 = vadd.f32 %v740_v13, %v578_v20 }
 0x1cc   : > { %641 = vst.msk [vmem:[%s995_s8 + $0x18] sm:$0xff] %vm324_vm0, %v587_v19 }
 0x1cd   : > { %639 = vst.msk [vmem:[%s995_s8 + $0x8] sm:$0xff] %vm324_vm0, %v579_v21 }
 0x1cf   : > { %v825_v22 = vpop.f32.mrb[0].mxu1 }
 0x1d0   : > { %v600_v23 = vadd.f32 %v825_v22, %v740_v13  ;;  %v591_v24 = vpop.f32.mrb[1].mxu1 }
 0x1d1   : > { %v592_v25 = vadd.f32 %v740_v13, %v591_v24  ;;  %v826_v26 = vpop.f32.mrb[2].mxu1 }
 0x1d2   : > { %644 = vst.msk [vmem:[%s995_s8 + $0x30] sm:$0xff] %vm324_vm0, %v600_v23  ;;  %v603_v27 = vadd.f32 %v826_v26, %v740_v13  ;;  %v594_v28 = vpop.f32.mrb[3].mxu1 }
 0x1d3   : > { %642 = vst.msk [vmem:[%s995_s8 + $0x20] sm:$0xff] %vm324_vm0, %v592_v25  ;;  %v595_v29 = vadd.f32 %v740_v13, %v594_v28 }
 0x1d4   : > { %645 = vst.msk [vmem:[%s995_s8 + $0x38] sm:$0xff] %vm324_vm0, %v603_v27 }
 0x1d5   : > { %643 = vst.msk [vmem:[%s995_s8 + $0x28] sm:$0xff] %vm324_vm0, %v595_v29 }
 0x1d7   : > { %v829_v30 = vpop.f32.mrb[4].mxu1 }
 0x1d8   : > { %v616_v31 = vadd.f32 %v829_v30, %v740_v13  ;;  %v607_v32 = vpop.f32.mrb[5].mxu1 }
 0x1d9   : > { %v608_v33 = vadd.f32 %v740_v13, %v607_v32  ;;  %v830_v34 = vpop.f32.mrb[6].mxu1 }
 0x1da   : > { %648 = vst.msk [vmem:[%s995_s8 + $0x50] sm:$0xff] %vm324_vm0, %v616_v31  ;;  %v619_v35 = vadd.f32 %v830_v34, %v740_v13  ;;  %v610_v36 = vpop.f32.mrb[7].mxu1 }
 0x1db   : > { %646 = vst.msk [vmem:[%s995_s8 + $0x40] sm:$0xff] %vm324_vm0, %v608_v33  ;;  %v611_v37 = vadd.f32 %v740_v13, %v610_v36 }
 0x1dc   : > { %649 = vst.msk [vmem:[%s995_s8 + $0x58] sm:$0xff] %vm324_vm0, %v619_v35 }
 0x1dd   : > { %647 = vst.msk [vmem:[%s995_s8 + $0x48] sm:$0xff] %vm324_vm0, %v611_v37 }
 0x1df   : > { %v833_v38 = vpop.f32.mrb[8].mxu1 }
 0x1e0   : > { %v632_v39 = vadd.f32 %v833_v38, %v740_v13  ;;  %v623_v40 = vpop.f32.mrb[9].mxu1 }
 0x1e1   : > { %v624_v41 = vadd.f32 %v740_v13, %v623_v40  ;;  %v834_v42 = vpop.f32.mrb[10].mxu1 }
 0x1e2   : > { %652 = vst.msk [vmem:[%s995_s8 + $0x70] sm:$0xff] %vm324_vm0, %v632_v39  ;;  %v635_v43 = vadd.f32 %v834_v42, %v740_v13  ;;  %v626_v44 = vpop.f32.mrb[11].mxu1 }
 0x1e3   : > { %650 = vst.msk [vmem:[%s995_s8 + $0x60] sm:$0xff] %vm324_vm0, %v624_v41  ;;  %v627_v45 = vadd.f32 %v740_v13, %v626_v44 }
 0x1e4   : > { %653 = vst.msk [vmem:[%s995_s8 + $0x78] sm:$0xff] %vm324_vm0, %v635_v43 }
 0x1e5   : > { %651 = vst.msk [vmem:[%s995_s8 + $0x68] sm:$0xff] %vm324_vm0, %v627_v45 }
 0x1e6 PF: > { %s15_s18 = sadd.s32 1, %s885_s18  }
 0x1e7   : > { %p12_p4 = scmp.ge.s32.totalorder %s15_s18, 4  }
 0x1e9   :  { %14 = sbr.rel (!%p12_p4) target bundleno = 1 (0x1), region = 70 }

</bundles_post_ra>
